<compile_context>
chip_gen: v7x
topology: tpu7x:2x2x1
jax: 0.10.0
libtpu: 0.0.40
codegen_flags: <defaults>
</compile_context>

<pallas_src>
import numpy as np
import jax
import jax.numpy as jnp
from jax.experimental import pallas as pl
from jax.experimental.pallas import tpu as pltpu

BETA = 0.9
GAMMA = -0.1
EPSILON = 2.0
_LANE = 128


def _hard_concrete_gate(u, c):
    # torch: s = sigmoid(log u - log(1-u) + c); s_ = s*(eps-gamma)+gamma;
    #        z = (s_>0)*s_ ; z = (z>1) + (z<=1)*z   ==  clip(s_, 0, 1)
    s = jax.nn.sigmoid(jnp.log(u) - jnp.log(1.0 - u) + c)
    s_ = s * (EPSILON - GAMMA) + GAMMA
    return jnp.clip(s_, 0.0, 1.0)


def make_kernel(compute_dtype):
    def kernel(bfc_ref,                 # SMEM (1,)  fc_experts bias
               x_ref,                   # (BM, F)    streamed in compute dtype
               w1_ref,                  # (F, H)     gated + wfc-folded trans1 weight
               w2_ref,                  # (H, D)     gated high_layers weight
               tw1_ref, tb1_ref,        # (D, T*th), (1, T*th)   batched tower fc1
               tw2_ref, tb2_ref,        # (T*th, OP), (1, OP)    block-diag tower fc2
               sigm_ref,                # (1, OP)    1.0 on binary-task columns
               out_ref):                # (BM, OP)
        cdt = compute_dtype

        # trans1 (+ folded fc_experts weight): single (BM,F)@(F,H) matmul.
        g = jnp.dot(x_ref[...].astype(cdt), w1_ref[...],
                    preferred_element_type=jnp.float32)                 # (BM, H)

        # high_layers + fc_experts bias + ReLU.
        h = jnp.dot(g.astype(cdt), w2_ref[...],
                    preferred_element_type=jnp.float32) + bfc_ref[0]    # (BM, D)
        h = jnp.maximum(h, 0.0)

        # Towers, batched across tasks (dropout = eval-mode identity).
        a = jnp.dot(h.astype(cdt), tw1_ref[...],
                    preferred_element_type=jnp.float32) + tb1_ref[...]  # (BM, T*th)
        a = jnp.maximum(a, 0.0)
        o = jnp.dot(a.astype(cdt), tw2_ref[...],
                    preferred_element_type=jnp.float32) + tb2_ref[...]  # (BM, OP)

        # Binary heads -> sigmoid; regression / pad columns pass through.
        o = jnp.where(sigm_ref[...] > 0.5, jax.nn.sigmoid(o), o)
        out_ref[...] = o.astype(out_ref.dtype)                          # lane-dense store
    return kernel


def prepare_params(raw, *, task_types, task_out_dims, compute_dtype=jnp.float32):
    """Parameter-only preprocessing (done once per parameter set, not per batch).

    Folds the hard-concrete gating AND the fc_experts linear combine into the
    trans1 weight.  Valid only because:
      * fc_experts is linear and applied before the ReLU, and
      * high_layers (trans2) weight/gate do not depend on the expert index.
    """
    Fdim, E, H = raw['u1'].shape
    H2, D = raw['u2'].shape
    assert H2 == H, "high_layers weight must be expert-independent (fold assumption)"
    assert raw['wfc'].shape == (E,), "fc_experts must be a linear combine over experts"
    T = len(task_out_dims)
    th = raw['tw1'].shape[-1]
    total_out = sum(task_out_dims)
    OP = max(_LANE, ((total_out + _LANE - 1) // _LANE) * _LANE)

    c1 = jnp.log(raw['alpha1'][0]) / BETA
    c2 = jnp.log(raw['alpha2'][0]) / BETA
    z1 = _hard_concrete_gate(raw['u1'], c1)                     # (F, E, H)
    z2 = _hard_concrete_gate(raw['u2'], c2)                     # (H, D)

    # Fold: sum_e gate(.)*w1[:,e,:]*wfc[e]  -> single (F, H) first-layer weight.
    w1_fold = jnp.einsum('feh,e->fh', z1 * raw['w1'], raw['wfc'],
                         precision=jax.lax.Precision.HIGHEST)   # (F, H)
    w2_gated = z2 * raw['w2']                                   # (H, D)

    # Batched tower fc1: (D, T*th) weight + (1, T*th) bias.
    tw1_cat = jnp.transpose(raw['tw1'], (1, 0, 2)).reshape(D, T * th)
    tb1_cat = raw['tb1'].reshape(1, T * th)

    # Batched tower fc2: block-diagonal (T*th, OP) weight, lane-padded to 128.
    tw2_blk = np.zeros((T * th, OP), np.float32)
    tb2_cat = np.zeros((1, OP), np.float32)
    sig_mask = np.zeros((1, OP), np.float32)
    tw2_np = np.asarray(raw['tw2'])
    tb2_np = np.asarray(raw['tb2'])
    col = 0
    for t in range(T):
        d = task_out_dims[t]
        tw2_blk[t * th:(t + 1) * th, col:col + d] = tw2_np[t][:, :d]
        tb2_cat[0, col:col + d] = tb2_np[t, 0, :d]
        if task_types[t] == 'binary':
            sig_mask[0, col:col + d] = 1.0
        col += d

    return dict(
        bfc=raw['bfc'].astype(jnp.float32),
        w1=w1_fold.astype(compute_dtype),
        w2=w2_gated.astype(compute_dtype),
        tw1=jnp.asarray(tw1_cat, dtype=compute_dtype),
        tb1=jnp.asarray(tb1_cat, dtype=jnp.float32),
        tw2=jnp.asarray(tw2_blk, dtype=compute_dtype),
        tb2=jnp.asarray(tb2_cat, dtype=jnp.float32),
        sigm=jnp.asarray(sig_mask, dtype=jnp.float32),
        meta=dict(E=E, F=Fdim, H=H, D=D, T=T, th=th,
                  total_out=total_out, OP=OP, compute_dtype=compute_dtype),
    )


def model_forward(x, prep, *, batch_tile=1024):
    meta = prep['meta']
    B, Fdim = x.shape
    H, D = meta['H'], meta['D']
    Tth = meta['T'] * meta['th']
    OP = meta['OP']
    cdt = meta['compute_dtype']

    # Stream x in the compute dtype (halves the dominant HBM read for bf16).
    x = x.astype(cdt)

    # Batch tiling: single "parallel" grid axis.  Tile is sized so that when B
    # is large enough there are >=2 grid steps (shards across v7x's 2 TCs);
    # multiple of 16 for bf16 sublane packing, 8 otherwise.
    mult = 16 if cdt == jnp.bfloat16 else 8
    BM = max(mult, min(((pl.cdiv(B, 2) + mult - 1) // mult) * mult, batch_tile))
    B_pad = ((B + BM - 1) // BM) * BM
    if B_pad != B:
        x = jnp.pad(x, ((0, B_pad - B), (0, 0)))
    grid = (B_pad // BM,)

    smem = pl.BlockSpec(memory_space=pltpu.MemorySpace.SMEM)

    def rep2(shape):
        return pl.BlockSpec(shape, lambda i: (0, 0))

    grid_spec = pltpu.PrefetchScalarGridSpec(
        num_scalar_prefetch=0,
        grid=grid,
        in_specs=[
            smem,                                         # bfc (fc_experts bias)
            pl.BlockSpec((BM, Fdim), lambda i: (i, 0)),   # x (batch-tiled stream)
            rep2((Fdim, H)),                              # folded trans1 weight
            rep2((H, D)),                                 # gated high_layers weight
            rep2((D, Tth)),                               # batched tower fc1 W
            rep2((1, Tth)),                               # batched tower fc1 b
            rep2((Tth, OP)),                              # block-diag tower fc2 W
            rep2((1, OP)),                                # tower fc2 b (lane padded)
            rep2((1, OP)),                                # binary-task sigmoid mask
        ],
        out_specs=pl.BlockSpec((BM, OP), lambda i: (i, 0)),
    )

    fn = pl.pallas_call(
        make_kernel(cdt),
        out_shape=jax.ShapeDtypeStruct((B_pad, OP), jnp.float32),
        grid_spec=grid_spec,
        compiler_params=pltpu.CompilerParams(dimension_semantics=("parallel",)),
    )
    out = fn(prep['bfc'], x, prep['w1'], prep['w2'],
             prep['tw1'], prep['tb1'], prep['tw2'], prep['tb2'], prep['sigm'])
    return out[:B, :meta['total_out']]


# ----------------------------- pure-JAX reference -----------------------------

def reference(x, p, *, task_types, task_out_dims):
    """Mirrors the torch forward exactly (regul term is not returned)."""
    hp = jax.lax.Precision.HIGHEST
    z1 = _hard_concrete_gate(p['u1'], jnp.log(p['alpha1'][0]) / BETA)
    h1 = jnp.einsum('bf,feh->beh', x, z1 * p['w1'], precision=hp)
    z2 = _hard_concrete_gate(p['u2'], jnp.log(p['alpha2'][0]) / BETA)
    h2 = jnp.einsum('beh,hd->bed', h1, z2 * p['w2'], precision=hp)
    o = jnp.einsum('bed,e->bd', h2, p['wfc'], precision=hp) + p['bfc'][0]
    o = jnp.maximum(o, 0.0)
    outs = []
    for t in range(len(task_out_dims)):
        d = task_out_dims[t]
        a = jnp.maximum(
            jnp.einsum('bd,dh->bh', o, p['tw1'][t], precision=hp) + p['tb1'][t, 0], 0.0)
        r = jnp.einsum('bh,ho->bo', a, p['tw2'][t][:, :d], precision=hp) + p['tb2'][t, 0, :d]
        if task_types[t] == 'binary':
            r = jax.nn.sigmoid(r)
        outs.append(r)
    return jnp.concatenate(outs, axis=-1)


if __name__ == "__main__":
    # batch, num_feature, num_experts, SB_hidden, SB_output, towers_hidden
    B, Fdim, E, H, D, TH = 8, 8, 4, 16, 16, 8
    task_types = ('binary', 'regression')
    task_out_dims = (1, 1)
    T = len(task_types)
    max_od = max(task_out_dims)

    key = jax.random.PRNGKey(0)
    ks = jax.random.split(key, 16)
    f32 = jnp.float32

    raw = dict(
        alpha1=jax.random.uniform(ks[0], (1,), dtype=f32, minval=0.1, maxval=1.0),
        u1=jax.random.uniform(ks[1], (Fdim, E, H), dtype=f32, minval=0.05, maxval=0.95),
        w1=jax.random.normal(ks[2], (Fdim, E, H), dtype=f32) * 0.2,      # ~ xavier_normal
        alpha2=jax.random.uniform(ks[3], (1,), dtype=f32, minval=0.1, maxval=1.0),
        u2=jax.random.uniform(ks[4], (H, D), dtype=f32, minval=0.05, maxval=0.95),
        w2=jax.random.normal(ks[5], (H, D), dtype=f32) * 0.2,
        wfc=jax.random.normal(ks[6], (E,), dtype=f32) * 0.5,             # fc_experts weight (1,E)
        bfc=jax.random.normal(ks[7], (1,), dtype=f32) * 0.1,             # fc_experts bias
        tw1=jax.random.normal(ks[8], (T, D, TH), dtype=f32) * 0.3,       # tower fc1 (in,out)
        tb1=jax.random.normal(ks[9], (T, 1, TH), dtype=f32) * 0.1,
        tw2=jax.random.normal(ks[10], (T, TH, max_od), dtype=f32) * 0.3,  # tower fc2 (in,out)
        tb2=jax.random.normal(ks[11], (T, 1, max_od), dtype=f32) * 0.1,
    )
    x = jax.random.normal(ks[12], (B, Fdim), dtype=f32)

    ref = reference(x, raw, task_types=task_types, task_out_dims=task_out_dims)

    # f32 MXU path -- tight check.
    prep32 = prepare_params(raw, task_types=task_types, task_out_dims=task_out_dims,
                            compute_dtype=jnp.float32)
    out32 = jax.block_until_ready(model_forward(x, prep32))
    np.testing.assert_allclose(np.asarray(out32), np.asarray(ref), rtol=5e-3, atol=5e-3)

    # bf16 MXU path (native matmul dtype; x streamed as bf16; f32 accumulate).
    prep16 = prepare_params(raw, task_types=task_types, task_out_dims=task_out_dims,
                            compute_dtype=jnp.bfloat16)
    out16 = jax.block_until_ready(model_forward(x, prep16))
    np.testing.assert_allclose(np.asarray(out16), np.asarray(ref), rtol=5e-2, atol=5e-2)

    # TODO(synk): dropout is modeled as eval-mode identity; the unused L0-style
    # regularization term (regul) is not part of the returned results and is skipped.
    print("KERNEL_OK")
</pallas_src>

<mosaic_0001>
module attributes {stable_mosaic.version = 11 : i64} {
  func.func @kernel(%arg0: i32, %arg1: memref<1xf32, #tpu.memory_space<smem>>, %arg2: memref<8x8xf32, #tpu.memory_space<vmem>>, %arg3: memref<8x16xf32, #tpu.memory_space<vmem>>, %arg4: memref<16x16xf32, #tpu.memory_space<vmem>>, %arg5: memref<16x16xf32, #tpu.memory_space<vmem>>, %arg6: memref<1x16xf32, #tpu.memory_space<vmem>>, %arg7: memref<16x128xf32, #tpu.memory_space<vmem>>, %arg8: memref<1x128xf32, #tpu.memory_space<vmem>>, %arg9: memref<1x128xf32, #tpu.memory_space<vmem>>, %arg10: memref<8x128xf32, #tpu.memory_space<vmem>>) attributes {dimension_semantics = [#tpu.dimension_semantics<parallel>], iteration_bounds = array<i64: 1>, scalar_prefetch = 0 : i64, scratch_operands = 0 : i64, tpu.core_type = #tpu.core_type<tc>, window_params = [{transform_indices = @transform_0, window_bounds = array<i64: 1>}, {transform_indices = @transform_1, window_bounds = array<i64: 8, 8>}, {pipeline_mode = #tpu.pipeline_mode<synchronous>, transform_indices = @transform_2, window_bounds = array<i64: 8, 16>}, {pipeline_mode = #tpu.pipeline_mode<synchronous>, transform_indices = @transform_3, window_bounds = array<i64: 16, 16>}, {pipeline_mode = #tpu.pipeline_mode<synchronous>, transform_indices = @transform_4, window_bounds = array<i64: 16, 16>}, {pipeline_mode = #tpu.pipeline_mode<synchronous>, transform_indices = @transform_5, window_bounds = array<i64: 1, 16>}, {pipeline_mode = #tpu.pipeline_mode<synchronous>, transform_indices = @transform_6, window_bounds = array<i64: 16, 128>}, {pipeline_mode = #tpu.pipeline_mode<synchronous>, transform_indices = @transform_7, window_bounds = array<i64: 1, 128>}, {pipeline_mode = #tpu.pipeline_mode<synchronous>, transform_indices = @transform_8, window_bounds = array<i64: 1, 128>}, {transform_indices = @transform_9, window_bounds = array<i64: 8, 128>}]} {
    %c0 = arith.constant 0 : index
    %c0_0 = arith.constant 0 : index
    %0 = vector.load %arg2[%c0, %c0_0] : memref<8x8xf32, #tpu.memory_space<vmem>>, vector<8x8xf32>
    %c0_1 = arith.constant 0 : index
    %c0_2 = arith.constant 0 : index
    %1 = vector.load %arg3[%c0_1, %c0_2] : memref<8x16xf32, #tpu.memory_space<vmem>>, vector<8x16xf32>
    %cst = arith.constant dense<0.000000e+00> : vector<8x16xf32>
    %2 = tpu.matmul %0, %1, %cst {dimension_numbers = #tpu.dot_dimension_numbers<[1], [0], [0], [1], [0, 0, 1, 1], [], []>} : vector<8x8xf32>, vector<8x16xf32>, vector<8x16xf32> -> vector<8x16xf32>
    %c0_3 = arith.constant 0 : index
    %c0_4 = arith.constant 0 : index
    %3 = vector.load %arg4[%c0_3, %c0_4] : memref<16x16xf32, #tpu.memory_space<vmem>>, vector<16x16xf32>
    %cst_5 = arith.constant dense<0.000000e+00> : vector<8x16xf32>
    %4 = tpu.matmul %2, %3, %cst_5 {dimension_numbers = #tpu.dot_dimension_numbers<[1], [0], [0], [1], [0, 0, 1, 1], [], []>} : vector<8x16xf32>, vector<16x16xf32>, vector<8x16xf32> -> vector<8x16xf32>
    %c0_6 = arith.constant 0 : index
    %5 = memref.load %arg1[%c0_6] : memref<1xf32, #tpu.memory_space<smem>>
    %6 = vector.broadcast %5 : f32 to vector<8x16xf32>
    %7 = arith.addf %4, %6 : vector<8x16xf32>
    %cst_7 = arith.constant 0.000000e+00 : f32
    %8 = vector.broadcast %cst_7 : f32 to vector<8x16xf32>
    %9 = arith.maximumf %7, %8 : vector<8x16xf32>
    %c0_8 = arith.constant 0 : index
    %c0_9 = arith.constant 0 : index
    %10 = vector.load %arg5[%c0_8, %c0_9] : memref<16x16xf32, #tpu.memory_space<vmem>>, vector<16x16xf32>
    %cst_10 = arith.constant dense<0.000000e+00> : vector<8x16xf32>
    %11 = tpu.matmul %9, %10, %cst_10 {dimension_numbers = #tpu.dot_dimension_numbers<[1], [0], [0], [1], [0, 0, 1, 1], [], []>} : vector<8x16xf32>, vector<16x16xf32>, vector<8x16xf32> -> vector<8x16xf32>
    %c0_11 = arith.constant 0 : index
    %c0_12 = arith.constant 0 : index
    %12 = vector.load %arg6[%c0_11, %c0_12] : memref<1x16xf32, #tpu.memory_space<vmem>>, vector<1x16xf32>
    %13 = vector.broadcast %12 : vector<1x16xf32> to vector<8x16xf32>
    %14 = arith.addf %11, %13 : vector<8x16xf32>
    %cst_13 = arith.constant 0.000000e+00 : f32
    %15 = vector.broadcast %cst_13 : f32 to vector<8x16xf32>
    %16 = arith.maximumf %14, %15 : vector<8x16xf32>
    %c0_14 = arith.constant 0 : index
    %c0_15 = arith.constant 0 : index
    %17 = vector.load %arg7[%c0_14, %c0_15] : memref<16x128xf32, #tpu.memory_space<vmem>>, vector<16x128xf32>
    %cst_16 = arith.constant dense<0.000000e+00> : vector<8x128xf32>
    %18 = tpu.matmul %16, %17, %cst_16 {dimension_numbers = #tpu.dot_dimension_numbers<[1], [0], [0], [1], [0, 0, 1, 1], [], []>} : vector<8x16xf32>, vector<16x128xf32>, vector<8x128xf32> -> vector<8x128xf32>
    %c0_17 = arith.constant 0 : index
    %c0_18 = arith.constant 0 : index
    %19 = vector.load %arg8[%c0_17, %c0_18] : memref<1x128xf32, #tpu.memory_space<vmem>>, vector<1x128xf32>
    %20 = vector.broadcast %19 : vector<1x128xf32> to vector<8x128xf32>
    %21 = arith.addf %18, %20 : vector<8x128xf32>
    %c0_19 = arith.constant 0 : index
    %c0_20 = arith.constant 0 : index
    %22 = vector.load %arg9[%c0_19, %c0_20] : memref<1x128xf32, #tpu.memory_space<vmem>>, vector<1x128xf32>
    %cst_21 = arith.constant 5.000000e-01 : f32
    %23 = vector.broadcast %cst_21 : f32 to vector<1x128xf32>
    %24 = arith.cmpf ogt, %22, %23 : vector<1x128xf32>
    %25 = arith.negf %21 : vector<8x128xf32>
    %26 = math.exp %25 : vector<8x128xf32>
    %cst_22 = arith.constant 1.000000e+00 : f32
    %27 = vector.broadcast %cst_22 : f32 to vector<8x128xf32>
    %28 = arith.addf %27, %26 : vector<8x128xf32>
    %29 = arith.divf %27, %28 : vector<8x128xf32>
    %30 = vector.shape_cast %24 : vector<1x128xi1> to vector<1x128xi1>
    %31 = vector.broadcast %30 : vector<1x128xi1> to vector<8x128xi1>
    %32 = arith.select %31, %29, %21 : vector<8x128xi1>, vector<8x128xf32>
    %c0_23 = arith.constant 0 : index
    %c0_24 = arith.constant 0 : index
    %33 = vector.load %arg10[%c0_23, %c0_24] : memref<8x128xf32, #tpu.memory_space<vmem>>, vector<8x128xf32>
    tpu.vector_store %arg10[%c0_23, %c0_24], %32 {strides = array<i32>} : memref<8x128xf32, #tpu.memory_space<vmem>>, vector<8x128xf32>,
    return
  }
  func.func @transform_0(%arg0: i32) -> i32 {
    %c0_i32 = arith.constant 0 : i32
    %c0_i32_0 = arith.constant 0 : i32
    return %c0_i32 : i32
  }
  func.func @transform_1(%arg0: i32) -> (i32, i32) {
    %c0_i32 = arith.constant 0 : i32
    %c0_i32_0 = arith.constant 0 : i32
    return %arg0, %c0_i32 : i32, i32
  }
  func.func @transform_2(%arg0: i32) -> (i32, i32) {
    %c0_i32 = arith.constant 0 : i32
    %c0_i32_0 = arith.constant 0 : i32
    %c0_i32_1 = arith.constant 0 : i32
    return %c0_i32, %c0_i32_0 : i32, i32
  }
  func.func @transform_3(%arg0: i32) -> (i32, i32) {
    %c0_i32 = arith.constant 0 : i32
    %c0_i32_0 = arith.constant 0 : i32
    %c0_i32_1 = arith.constant 0 : i32
    return %c0_i32, %c0_i32_0 : i32, i32
  }
  func.func @transform_4(%arg0: i32) -> (i32, i32) {
    %c0_i32 = arith.constant 0 : i32
    %c0_i32_0 = arith.constant 0 : i32
    %c0_i32_1 = arith.constant 0 : i32
    return %c0_i32, %c0_i32_0 : i32, i32
  }
  func.func @transform_5(%arg0: i32) -> (i32, i32) {
    %c0_i32 = arith.constant 0 : i32
    %c0_i32_0 = arith.constant 0 : i32
    %c0_i32_1 = arith.constant 0 : i32
    return %c0_i32, %c0_i32_0 : i32, i32
  }
  func.func @transform_6(%arg0: i32) -> (i32, i32) {
    %c0_i32 = arith.constant 0 : i32
    %c0_i32_0 = arith.constant 0 : i32
    %c0_i32_1 = arith.constant 0 : i32
    return %c0_i32, %c0_i32_0 : i32, i32
  }
  func.func @transform_7(%arg0: i32) -> (i32, i32) {
    %c0_i32 = arith.constant 0 : i32
    %c0_i32_0 = arith.constant 0 : i32
    %c0_i32_1 = arith.constant 0 : i32
    return %c0_i32, %c0_i32_0 : i32, i32
  }
  func.func @transform_8(%arg0: i32) -> (i32, i32) {
    %c0_i32 = arith.constant 0 : i32
    %c0_i32_0 = arith.constant 0 : i32
    %c0_i32_1 = arith.constant 0 : i32
    return %c0_i32, %c0_i32_0 : i32, i32
  }
  func.func @transform_9(%arg0: i32) -> (i32, i32) {
    %c0_i32 = arith.constant 0 : i32
    %c0_i32_0 = arith.constant 0 : i32
    return %arg0, %c0_i32 : i32, i32
  }
}

</mosaic_0001>

<bundles_post_ra>
// kernel: tpu_custom_call.1
= control target key start
LH: loop header
LB: loop body
LE: loop exit
PB: predicated region body
PF: predicated region fallthrough
CT: control target
= control target key end

     0   :  { %15 = vsyncpa [#allocation4], 0  ;;  %s770_s0 = inlined_call_operand.<no memory space> [shape: f32[1], index: 0, kind: input, shape index: {}]   ;;  %s771_s1 = inlined_call_operand.hbm [shape: f32[8,8], index: 1, kind: input, shape index: {}]   ;;  %s772_s2 = inlined_call_operand.hbm [shape: f32[8,16], index: 2, kind: input, shape index: {}]   ;;  %s773_s3 = inlined_call_operand.hbm [shape: f32[16,16], index: 3, kind: input, shape index: {}]   ;;  %s774_s4 = inlined_call_operand.hbm [shape: f32[16,16], index: 4, kind: input, shape index: {}]   ;;  %s775_s5 = inlined_call_operand.vmem [shape: f32[1,16], index: 5, kind: input, shape index: {}]   ;;  %s776_s6 = inlined_call_operand.vmem [shape: f32[16,128], index: 6, kind: input, shape index: {}]   ;;  %s777_s7 = inlined_call_operand.vmem [shape: f32[1,128], index: 7, kind: input, shape index: {}]   ;;  %s778_s8 = inlined_call_operand.vmem [shape: f32[1,128], index: 8, kind: input, shape index: {}]   ;;  %s779_s9 = inlined_call_operand.hbm [shape: f32[8,128], index: 9, kind: output, shape index: {}]  }
   0x1   :  { %16 = vsyncpa [#allocation7], 0 }
   0x2   :  { %17 = vsyncpa [#allocation10], 0 }
   0x3   :  { %18 = vsyncpa [#allocation5], 0  ;;  %s624_s30 = smov [#allocation6]   ;;  %s625_s11 = smov [#allocation3]  }
   0x4   :  { %s37_s10 = sshll.u32 %s624_s30, 4  ;;  %s27_s12 = sshll.u32 %s625_s11, 4  ;;  %s38_s10 = int_to_ptr.vmem [resolvable:$true] %s37_s10  ;;  %s28_s12 = int_to_ptr.vmem [resolvable:$true] %s27_s12 }
   0x5   :  { %s506_s15 = scalar_lea.hbm %s772_s2, 128 }
   0x6   :  { %p507_p0 = scmp.ne.s32.totalorder %s772_s2, %s506_s15  ;;  %p510_p1 = scmp.lt.u32.totalorder %s506_s15, %s772_s2 }
   0x8   :  { %p512_p2 = pnand %p510_p1, %p507_p0 }
   0xa   :  { %515 = shalt.err (!%p512_p2)
}
   0xb   :  { %s516_s20 = scalar_lea.vmem %s38_s10, 128  ;;  %p521_p4 = scmp.lt.s32.totalorder %s38_s10, %s38_s10 }
   0xc   :  { %p517_p3 = scmp.ne.s32.totalorder %s38_s10, %s516_s20  ;;  %p522_p5 = scmp.lt.s32.totalorder %s516_s20, %s516_s20 }
   0xe   :  { %p523_p6 = por %p522_p5, %p521_p4 }
  0x10   :  { %p524_p7 = pnand %p523_p6, %p517_p3 }
  0x12   :  { %527 = shalt.err (!%p524_p7)
}
  0x13   :  { %40 = dma.hbm_to_vmem [thread:$0]  %s772_s2, 128, %s38_s10, [#allocation7]  }
  0x14   :  { %s528_s25 = scalar_lea.hbm %s771_s1, 128 }
  0x15   :  { %p529_p8 = scmp.ne.s32.totalorder %s771_s1, %s528_s25  ;;  %p532_p9 = scmp.lt.u32.totalorder %s528_s25, %s771_s1 }
  0x17   :  { %p534_p10 = pnand %p532_p9, %p529_p8 }
  0x19   :  { %537 = shalt.err (!%p534_p10)
}
  0x1a   :  { %s538_s30 = scalar_lea.vmem %s28_s12, 128  ;;  %p543_p12 = scmp.lt.s32.totalorder %s28_s12, %s28_s12 }
  0x1b   :  { %p539_p11 = scmp.ne.s32.totalorder %s28_s12, %s538_s30  ;;  %p544_p13 = scmp.lt.s32.totalorder %s538_s30, %s538_s30 }
  0x1d   :  { %p545_p0 = por %p544_p13, %p543_p12 }
  0x1f   :  { %p546_p1 = pnand %p545_p0, %p539_p11 }
  0x21   :  { %549 = shalt.err (!%p546_p1)
}
  0x22   :  { %30 = dma.hbm_to_vmem [thread:$0]  %s771_s1, 128, %s28_s12, [#allocation4]  }
  0x23   :  { %s626_s11 = smov [#allocation8]   ;;  %s550_s16 = scalar_lea.hbm %s773_s3, 256 }
  0x24   :  { %s46_s13 = sshll.u32 %s626_s11, 4  ;;  %p551_p2 = scmp.ne.s32.totalorder %s773_s3, %s550_s16  ;;  %s47_s13 = int_to_ptr.vmem [resolvable:$true] %s46_s13 }
  0x25   :  { %p554_p3 = scmp.lt.u32.totalorder %s550_s16, %s773_s3 }
  0x27   :  { %p556_p4 = pnand %p554_p3, %p551_p2 }
  0x29   :  { %559 = shalt.err (!%p556_p4)
}
  0x2a   :  { %s560_s21 = scalar_lea.vmem %s47_s13, 256  ;;  %p565_p6 = scmp.lt.s32.totalorder %s47_s13, %s47_s13 }
  0x2b   :  { %p561_p5 = scmp.ne.s32.totalorder %s47_s13, %s560_s21  ;;  %p566_p7 = scmp.lt.s32.totalorder %s560_s21, %s560_s21 }
  0x2d   :  { %p567_p8 = por %p566_p7, %p565_p6 }
  0x2f   :  { %p568_p9 = pnand %p567_p8, %p561_p5 }
  0x31   :  { %571 = shalt.err (!%p568_p9)
}
  0x32   :  { %s627_s1 = smov 128   ;;  %s628_s12 = smov 8  }
  0x33   :  { %52 = dma.hbm_to_vmem [thread:$0]  %s773_s3, 256, %s47_s13, [#allocation7], %s627_s1, %s627_s1, %s628_s12  }
  0x34   :  { %s629_s24 = smov [#allocation9]   ;;  %s572_s28 = scalar_lea.hbm %s774_s4, 256 }
  0x35   :  { %s58_s25 = sshll.u32 %s629_s24, 4  ;;  %p573_p10 = scmp.ne.s32.totalorder %s774_s4, %s572_s28  ;;  %s59_s25 = int_to_ptr.vmem [resolvable:$true] %s58_s25 }
  0x36   :  { %p576_p11 = scmp.lt.u32.totalorder %s572_s28, %s774_s4 }
  0x38   :  { %p578_p12 = pnand %p576_p11, %p573_p10 }
  0x3a   :  { %581 = shalt.err (!%p578_p12)
}
  0x3b   :  { %s582_s11 = scalar_lea.vmem %s59_s25, 256  ;;  %p587_p0 = scmp.lt.s32.totalorder %s59_s25, %s59_s25 }
  0x3c   :  { %p583_p13 = scmp.ne.s32.totalorder %s59_s25, %s582_s11  ;;  %p588_p1 = scmp.lt.s32.totalorder %s582_s11, %s582_s11 }
  0x3e   :  { %p589_p2 = por %p588_p1, %p587_p0 }
  0x40   :  { %p590_p3 = pnand %p589_p2, %p583_p13 }
  0x42   :  { %593 = shalt.err (!%p590_p3)
}
  0x43   :  { %64 = dma.hbm_to_vmem [thread:$0]  %s774_s4, 256, %s59_s25, [#allocation10], %s627_s1, %s627_s1, %s628_s12  }
  0x44   :  { %616 = dma.done.wait [#allocation4], 128  }
  0x45   :  { %617 = vsyncadd [#allocation4], 4294967168 }
  0x46   :  { %618 = dma.done.wait [#allocation7], 384  }
  0x47   :  { %619 = vsyncadd [#allocation7], 4294966912 }
  0x48   :  { %620 = dma.done.wait [#allocation10], 256  }
  0x49   :  { %621 = vsyncadd [#allocation10], 4294967040  ;;  %v630_v0 = vmov 0.0   ;;  %vm631_vm0 = vmmov 0   ;;  %v632_v1 = vmov 0.0|0.0   ;;  %vm87_vm1 = vcmask 64512  }
  0x4a   :  { %456 = vmatprep.subr.mxu0 %v630_v0  ;;  %458 = vmatprep.mubr.msk.f32.mxu0 %vm631_vm0, %v630_v0  ;;  %v86_v2 = vld [vmem:[#allocation6] sm:$0xff]  ;;  %v85_v3 = vld [vmem:[#allocation3] sm:$0xff]  ;;  %v161_v4 = vld [vmem:[#allocation8] sm:$0xff]  ;;  %vm165_vm2 = vcmask 130048   ;;  %v164_v12 = vstv %s770_s0  ;;  %v414_v30 = vlaneseq  ;;  %v633_v36 = vmov 0  }
  0x4b   :  { %482 = vmatprep.subr.bf16.mxu1 %v632_v1  ;;  %465 = vmatprep.mubr.msk.f32.mxu1 %vm631_vm0, %v630_v0  ;;  %v162_v5 = vld [vmem:[#allocation8 + $0x8] sm:$0xff]  ;;  %v240_v9 = vld [vmem:[#allocation9] sm:$0xff]  ;;  %v241_v10 = vld [vmem:[#allocation9 + $0x8] sm:$0xff] }
  0x4c   :  { %457 = vmatpush3.msra.mxu0 %v86_v2  ;;  %v483_v6 = vpack.c.bf16 %v162_v5, %v161_v4  ;;  %v486_v11 = vpack.c.bf16 %v241_v10, %v240_v9  ;;  %v323_v17 = vld [vmem:[%s776_s6] sm:$0xff]  ;;  %v324_v18 = vld [vmem:[%s776_s6 + $0x8] sm:$0xff]  ;;  %v415_v32 = vshrl.u32 %v414_v30, 7 }
  0x4d   :  { %459 = vmatmul.mubr.msk.f32.vlgmr.msra.gmra.mrb[0].mxu0 %vm87_vm1, %v85_v3  ;;  %485 = vmatprep.subr.bf16.mxu0 %v632_v1  ;;  %v489_v19 = vpack.c.bf16 %v324_v18, %v323_v17  ;;  %v440_v20 = vld [vmem:[%s775_s5] ss:$0 sm:$0xff]  ;;  %s634_s5 = smov [#allocation11]  }
  0x4e   :  { %472 = vmatprep.mubr.msk.f32.mxu0 %vm631_vm0, %v630_v0  ;;  %484 = vmatpush3.bf16.msra.mxu1 %v483_v6  ;;  %v442_v25 = vld [vmem:[%s777_s7] ss:$0 sm:$0xff]  ;;  %v416_v35 = vsub.s32 0, %v415_v32  ;;  %s427_s7 = sshll.u32 %s634_s5, 4  ;;  %s428_s7 = int_to_ptr.vmem [resolvable:$true] %s427_s7 }
  0x4f   :  { %488 = vmatprep.subr.bf16.mxu1 %v632_v1  ;;  %487 = vmatpush3.bf16.msra.mxu0 %v486_v11  ;;  %v405_v31 = vld [vmem:[%s778_s8] sm:$0x1]  ;;  %s594_s12 = scalar_lea.vmem %s428_s7, 128  ;;  %p599_p5 = scmp.lt.s32.totalorder %s428_s7, %s428_s7 }
  0x50   :  { %vm406_vm3 = vcmp.gt.f32.partialorder %v405_v31, 0.5  ;;  %p595_p4 = scmp.ne.s32.totalorder %s428_s7, %s594_s12  ;;  %p600_p6 = scmp.lt.s32.totalorder %s594_s12, %s594_s12 }
  0x51   :  { %v413_v37 = vsel %vm406_vm3, 1, %v633_v36 }
  0x52   :  { %v417_v38 = vrot.slane %v413_v37, %v416_v35  ;;  %p601_p7 = por %p600_p6, %p599_p5 }
  0x54   :  { %vm418_vm4 = vcmp.eq.s32.totalorder %v417_v38, 1  ;;  %p602_p8 = pnand %p601_p7, %p595_p4 }
 0x120   :  { %v157_v7 = vpop.f32.mrb[0].mxu0 }
 0x121   :  { %v460_v8 = vpop.f32.mrb[1].mxu0  ;;  %466 = vmatmul.mubr.msk.f32.vlgmr.msra.gmra.mrb[0].mxu1 %vm165_vm2, %v157_v7 }
 0x122   :  { %479 = vmatprep.mubr.msk.f32.mxu1 %vm631_vm0, %v630_v0  ;;  %490 = vmatpush3.bf16.msra.mxu1 %v489_v19 }
 0x1f4   :  { %v235_v13 = vpop.f32.mrb[0].mxu1 }
 0x1f5   :  { %v236_v14 = vadd.f32 %v235_v13, %v164_v12  ;;  %v467_v15 = vpop.f32.mrb[1].mxu1 }
 0x1f7   :  { %v239_v16 = vmax.f32 %v236_v14, 0.0 }
 0x1f9   :  { %473 = vmatmul.mubr.msk.f32.vlgmr.msra.gmra.mrb[2].mxu0 %vm165_vm2, %v239_v16 }
 0x2cc   :  { %v318_v21 = vpop.f32.mrb[2].mxu0 }
 0x2cd   :  { %v319_v22 = vadd.f32 %v440_v20, %v318_v21  ;;  %v474_v23 = vpop.f32.mrb[3].mxu0 }
 0x2cf   :  { %v322_v24 = vmax.f32 %v319_v22, 0.0 }
 0x2d1   :  { %480 = vmatmul.mubr.msk.f32.vlgmr.msra.gmra.mrb[2].mxu1 %vm165_vm2, %v322_v24 }
 0x3a4   :  { %v401_v26 = vpop.f32.mrb[2].mxu1 }
 0x3a5   :  { %v402_v27 = vadd.f32 %v442_v25, %v401_v26  ;;  %v481_v28 = vpop.f32.mrb[3].mxu1 }
 0x3a7   :  { %v444_v29 = vmul.f32 -1.442695, %v402_v27 }
 0x3a9   :  { %502 = vpow2.f32 %v444_v29 }
 0x3b3   :  { %v503_v33 = vpop.eup %502 }
 0x3b4   :  { %v410_v34 = vadd.f32 1.0, %v503_v33 }
 0x3b6   :  { %504 = vrcp.f32 %v410_v34 }
 0x3c0   :  { %v505_v39 = vpop.eup %504 }
 0x3c1   :  { %v419_v40 = vsel %vm418_vm4, %v505_v39, %v402_v27 }
 0x3c2   :  { %420 = vst [vmem:[#allocation11] sm:$0xff] %v419_v40 }
 0x3c3   :  { %605 = shalt.err (!%p602_p8)
}
 0x3c4   :  { %s606_s23 = scalar_lea.hbm %s779_s9, 128 }
 0x3c5   :  { %p607_p9 = scmp.ne.s32.totalorder %s779_s9, %s606_s23  ;;  %p610_p10 = scmp.lt.u32.totalorder %s606_s23, %s779_s9 }
 0x3c7   :  { %p612_p11 = pnand %p610_p10, %p607_p9 }
 0x3c9   :  { %615 = shalt.err (!%p612_p11)
}
 0x3ca   :  { %430 = dma.vmem_to_hbm [thread:$0]  %s428_s7, 128, %s779_s9, [#allocation5]  }
 0x3cb   :  { %622 = dma.done.wait [#allocation5], 128  }
 0x3cc   :  { %623 = vsyncadd [#allocation5], 4294967168 }
 0x3cd   :  { %434 = vsyncpa [#allocation4], 1 }
 0x3ce   :  { %435 = vsyncpa [#allocation7], 1 }
 0x3cf   :  { %436 = vsyncpa [#allocation10], 1 }
 0x3d0   :  { %437 = vsyncpa [#allocation5], 1 }

</bundles_post_ra>
